<compile_context>
chip_gen: v6e
topology: v6e:2x2x1
jax: 0.10.0
libtpu: 0.0.40
codegen_flags: <defaults>
</compile_context>

<pallas_src>
import functools

import jax
import jax.numpy as jnp
from jax.experimental import pallas as pl
from jax.experimental.pallas import tpu as pltpu

_LANE = 128
_SUBLANE = 8
_NUM_LAYERS = 6


def _round_up(n, m):
    return ((n + m - 1) // m) * m


# --------------------------------------------------------------------------
# Kernel
# --------------------------------------------------------------------------
def _autoencoder_kernel(x_ref, w_ref, b_ref, out_ref, *, input_dim):
    """Fused 6-layer MLP forward for one batch tile.

    x_ref   : (TB, input_dim)   f32   raw activation tile (cast in-kernel)
    w_ref   : (6, P, P)         bf16  stacked, transposed, zero-padded weights
                                      (layer 5 column-offset by output_dim)
    b_ref   : (6, 1, P)         f32   stacked, zero-padded biases (same offset)
    out_ref : (TB, P)           f32   packed output:
                                      lanes [0, output_dim)              -> e
                                      lanes [output_dim, out+input_dim)  -> y
    """
    P = w_ref.shape[-1]

    def layer(h, idx, relu, k=None):
        w = w_ref[idx]                       # (P, P) bf16
        if k is not None and k < P:
            w = w[:k, :]                     # static slice: shrink K for layer 0
        acc = jnp.dot(h, w, preferred_element_type=jnp.float32)   # MXU, f32 acc
        acc = acc + b_ref[idx]               # f32 bias add (VPU, f32 only)
        if relu:
            acc = jnp.maximum(acc, 0.0)      # f32 ReLU
        return acc

    # In-kernel bf16 cast of the raw input tile; pad K to the bf16 sublane
    # granule if input_dim is not aligned (no-op for aligned dims).
    x = x_ref[...].astype(jnp.bfloat16)                      # (TB, input_dim)
    k0 = min(P, _round_up(input_dim, 2 * _SUBLANE))
    if k0 != input_dim:
        x = jnp.pad(x, ((0, 0), (0, k0 - input_dim)))

    # --- encoder ---
    h = layer(x, 0, True, k=k0).astype(jnp.bfloat16)
    h = layer(h, 1, True).astype(jnp.bfloat16)
    e = layer(h, 2, False)                   # f32; real lanes [0, output_dim), rest exactly 0

    # --- decoder ---
    d = layer(e.astype(jnp.bfloat16), 3, True).astype(jnp.bfloat16)
    d = layer(d, 4, True).astype(jnp.bfloat16)
    y = layer(d, 5, False)                   # f32; real lanes [output_dim, output_dim+input_dim), rest 0

    # Disjoint lane ranges -> packing is a single VPU add, one lane-dense store.
    out_ref[...] = (e + y).astype(out_ref.dtype)


# --------------------------------------------------------------------------
# One-time parameter preprocessing (transpose, pad, offset, stack, cast)
# --------------------------------------------------------------------------
def prepare_params(params):
    """params: 6 x (W, b) in PyTorch layout: W (out, in), b (out,).

    Returns (W_stack bf16 (6,P,P), b_stack f32 (6,1,P), P, input_dim,
    output_dim, layer_dims).
    """
    assert len(params) == _NUM_LAYERS
    layer_dims = [(w.shape[1], w.shape[0]) for (w, _) in params]   # (in, out)
    input_dim = layer_dims[0][0]
    output_dim = layer_dims[2][1]
    max_dim = max(max(i, o) for (i, o) in layer_dims)
    # P must also fit the packed output: e lanes + y lanes.
    P = _round_up(max(max_dim, input_dim + output_dim), _LANE)

    # Column offset per layer: only the final decoder layer is shifted so its
    # output lands in lanes [output_dim, output_dim + input_dim).
    col_off = [0, 0, 0, 0, 0, output_dim]

    w_list, b_list = [], []
    for li, (w, b) in enumerate(params):
        w = jnp.asarray(w, jnp.float32).T                           # (in, out)
        off = col_off[li]
        wp = jnp.zeros((P, P), jnp.float32)
        wp = wp.at[: w.shape[0], off: off + w.shape[1]].set(w)
        bp = jnp.zeros((1, P), jnp.float32)
        bp = bp.at[0, off: off + b.shape[0]].set(jnp.asarray(b, jnp.float32))
        w_list.append(wp)
        b_list.append(bp)

    W = jnp.stack(w_list).astype(jnp.bfloat16)                      # (6, P, P)
    B = jnp.stack(b_list)                                           # (6, 1, P)
    return W, B, P, input_dim, output_dim, layer_dims


# --------------------------------------------------------------------------
# Wrapper
# --------------------------------------------------------------------------
def autoencoder_forward(x, prepared):
    W, Bias, P, input_dim, output_dim, layer_dims = prepared
    batch = x.shape[0]
    assert x.shape[1] == input_dim

    # Tile selection: up to 2048 rows per step, but never more than
    # ceil(batch/2) so large batches keep >=2 parallel grid steps (both
    # TensorCores active on v7x).  Small batches collapse to one 8-row tile.
    TB = min(2048, _round_up(max(pl.cdiv(batch, 2), _SUBLANE), _SUBLANE))
    b_pad = _round_up(batch, TB)
    if b_pad != batch:
        x = jnp.pad(x, ((0, b_pad - batch), (0, 0)))    # row-pad only (no lane pad/cast)
    x = x.astype(jnp.float32)

    # Advisory cost hint for XLA's scheduler (real, unpadded flops).
    flops = 2 * batch * sum(i * o for (i, o) in layer_dims)
    bytes_accessed = (b_pad * input_dim * 4            # input read (f32)
                      + W.size * 2 + Bias.size * 4     # params
                      + b_pad * P * 4)                 # packed output write
    cost = pl.CostEstimate(flops=flops, transcendentals=0,
                           bytes_accessed=bytes_accessed)

    grid = (b_pad // TB,)
    packed = pl.pallas_call(
        functools.partial(_autoencoder_kernel, input_dim=input_dim),
        out_shape=jax.ShapeDtypeStruct((b_pad, P), jnp.float32),
        grid=grid,
        in_specs=[
            pl.BlockSpec((TB, input_dim), lambda i: (i, 0)),                 # x tile (raw f32)
            pl.BlockSpec((_NUM_LAYERS, P, P), lambda i: (0, 0, 0)),          # weights (VMEM-resident)
            pl.BlockSpec((_NUM_LAYERS, 1, P), lambda i: (0, 0, 0)),          # biases  (VMEM-resident)
        ],
        out_specs=pl.BlockSpec((TB, P), lambda i: (i, 0)),                   # packed e|y
        compiler_params=pltpu.CompilerParams(
            dimension_semantics=("parallel",)),
        cost_estimate=cost,
    )(x, W, Bias)

    # Single cheap slice pass over the packed array; consumers that can use
    # lane views directly may take `packed` instead.
    e = packed[:batch, :output_dim]
    y = packed[:batch, output_dim:output_dim + input_dim]
    return e, y


# --------------------------------------------------------------------------
# Parameter init (nn.Linear-style) and pure-JAX references
# --------------------------------------------------------------------------
def make_params(key, input_dim, hidden_dim, output_dim):
    dims = [
        (input_dim, hidden_dim[0]),
        (hidden_dim[0], hidden_dim[1]),
        (hidden_dim[1], output_dim),
        (output_dim, hidden_dim[1]),
        (hidden_dim[1], hidden_dim[0]),
        (hidden_dim[0], input_dim),
    ]
    params = []
    for (fan_in, fan_out) in dims:
        key, kw, kb = jax.random.split(key, 3)
        bound = 1.0 / jnp.sqrt(fan_in)
        w = jax.random.uniform(kw, (fan_out, fan_in), jnp.float32, -bound, bound)
        b = jax.random.uniform(kb, (fan_out,), jnp.float32, -bound, bound)
        params.append((w, b))
    return params


def _reference_forward(x, params, op_dtype=jnp.float32):
    """Pure-JAX reference. op_dtype=f32 -> exact PyTorch semantics;
    op_dtype=bf16 -> same operand quantization as the kernel (f32 accumulate)."""

    def lin(h, w, b, relu):
        w = jnp.asarray(w, jnp.float32).T
        acc = jnp.dot(h.astype(op_dtype), w.astype(op_dtype),
                      preferred_element_type=jnp.float32)
        acc = acc + jnp.asarray(b, jnp.float32)
        if relu:
            acc = jnp.maximum(acc, 0.0)
        return acc

    h = lin(x, *params[0], True)
    h = lin(h, *params[1], True)
    e = lin(h, *params[2], False)
    d = lin(e, *params[3], True)
    d = lin(d, *params[4], True)
    y = lin(d, *params[5], False)
    return e, y


# --------------------------------------------------------------------------
if __name__ == "__main__":
    key = jax.random.PRNGKey(0)
    batch = 8
    input_dim, hidden_dim, output_dim = 64, [32, 16], 8

    k_x, k_p = jax.random.split(key)
    x = jax.random.normal(k_x, (batch, input_dim), jnp.float32)
    params = make_params(k_p, input_dim, hidden_dim, output_dim)

    prepared = prepare_params(params)                 # one-time preprocessing
    fwd = jax.jit(functools.partial(autoencoder_forward, prepared=prepared))

    e, y = fwd(x)
    jax.block_until_ready((e, y))

    assert e.shape == (batch, output_dim) and y.shape == (batch, input_dim)

    # Tight check vs a reference with identical bf16 operand quantization.
    e_q, y_q = _reference_forward(x, params, op_dtype=jnp.bfloat16)
    assert jnp.allclose(e, e_q, atol=2e-3, rtol=2e-3)
    assert jnp.allclose(y, y_q, atol=2e-3, rtol=2e-3)

    # Sanity check vs the exact f32 PyTorch semantics (bf16 operand error).
    e_ref, y_ref = _reference_forward(x, params, op_dtype=jnp.float32)
    assert jnp.allclose(e, e_ref, atol=5e-2, rtol=5e-2)
    assert jnp.allclose(y, y_ref, atol=5e-2, rtol=5e-2)

    print("KERNEL_OK")
</pallas_src>

<mosaic_0001>
module attributes {stable_mosaic.version = 11 : i64} {
  func.func @_autoencoder_kernel(%arg0: i32, %arg1: memref<8x64xf32, #tpu.memory_space<vmem>>, %arg2: memref<6x128x128xbf16, #tpu.memory_space<vmem>>, %arg3: memref<6x1x128xf32, #tpu.memory_space<vmem>>, %arg4: memref<8x128xf32, #tpu.memory_space<vmem>>) attributes {dimension_semantics = [#tpu.dimension_semantics<parallel>], iteration_bounds = array<i64: 1>, scalar_prefetch = 0 : i64, scratch_operands = 0 : i64, tpu.core_type = #tpu.core_type<tc>, window_params = [{transform_indices = @transform_0, window_bounds = array<i64: 8, 64>}, {pipeline_mode = #tpu.pipeline_mode<synchronous>, transform_indices = @transform_1, window_bounds = array<i64: 6, 128, 128>}, {pipeline_mode = #tpu.pipeline_mode<synchronous>, transform_indices = @transform_2, window_bounds = array<i64: 6, 1, 128>}, {transform_indices = @transform_3, window_bounds = array<i64: 8, 128>}]} {
    %c0 = arith.constant 0 : index
    %c0_0 = arith.constant 0 : index
    %0 = vector.load %arg1[%c0, %c0_0] : memref<8x64xf32, #tpu.memory_space<vmem>>, vector<8x64xf32>
    %1 = arith.truncf %0 : vector<8x64xf32> to vector<8x64xbf16>
    %c0_1 = arith.constant 0 : index
    %c0_2 = arith.constant 0 : index
    %c0_3 = arith.constant 0 : index
    %2 = vector.load %arg2[%c0_1, %c0_2, %c0_3] : memref<6x128x128xbf16, #tpu.memory_space<vmem>>, vector<1x128x128xbf16>
    %3 = vector.shape_cast %2 : vector<1x128x128xbf16> to vector<128x128xbf16>
    %4 = vector.extract_strided_slice %3 {offsets = [0, 0], sizes = [64, 128], strides = [1, 1]} : vector<128x128xbf16> to vector<64x128xbf16>
    %cst = arith.constant dense<0.000000e+00> : vector<8x128xf32>
    %5 = tpu.matmul %1, %4, %cst {dimension_numbers = #tpu.dot_dimension_numbers<[1], [0], [0], [1], [0, 0, 1, 1], [], []>} : vector<8x64xbf16>, vector<64x128xbf16>, vector<8x128xf32> -> vector<8x128xf32>
    %c0_4 = arith.constant 0 : index
    %c0_5 = arith.constant 0 : index
    %c0_6 = arith.constant 0 : index
    %6 = vector.load %arg3[%c0_4, %c0_5, %c0_6] : memref<6x1x128xf32, #tpu.memory_space<vmem>>, vector<1x1x128xf32>
    %7 = vector.shape_cast %6 : vector<1x1x128xf32> to vector<1x128xf32>
    %8 = vector.broadcast %7 : vector<1x128xf32> to vector<8x128xf32>
    %9 = arith.addf %5, %8 : vector<8x128xf32>
    %cst_7 = arith.constant 0.000000e+00 : f32
    %10 = vector.broadcast %cst_7 : f32 to vector<8x128xf32>
    %11 = arith.maximumf %9, %10 : vector<8x128xf32>
    %12 = arith.truncf %11 : vector<8x128xf32> to vector<8x128xbf16>
    %c1 = arith.constant 1 : index
    %c0_8 = arith.constant 0 : index
    %c0_9 = arith.constant 0 : index
    %13 = vector.load %arg2[%c1, %c0_8, %c0_9] : memref<6x128x128xbf16, #tpu.memory_space<vmem>>, vector<1x128x128xbf16>
    %14 = vector.shape_cast %13 : vector<1x128x128xbf16> to vector<128x128xbf16>
    %cst_10 = arith.constant dense<0.000000e+00> : vector<8x128xf32>
    %15 = tpu.matmul %12, %14, %cst_10 {dimension_numbers = #tpu.dot_dimension_numbers<[1], [0], [0], [1], [0, 0, 1, 1], [], []>} : vector<8x128xbf16>, vector<128x128xbf16>, vector<8x128xf32> -> vector<8x128xf32>
    %c1_11 = arith.constant 1 : index
    %c0_12 = arith.constant 0 : index
    %c0_13 = arith.constant 0 : index
    %16 = vector.load %arg3[%c1_11, %c0_12, %c0_13] : memref<6x1x128xf32, #tpu.memory_space<vmem>>, vector<1x1x128xf32>
    %17 = vector.shape_cast %16 : vector<1x1x128xf32> to vector<1x128xf32>
    %18 = vector.broadcast %17 : vector<1x128xf32> to vector<8x128xf32>
    %19 = arith.addf %15, %18 : vector<8x128xf32>
    %cst_14 = arith.constant 0.000000e+00 : f32
    %20 = vector.broadcast %cst_14 : f32 to vector<8x128xf32>
    %21 = arith.maximumf %19, %20 : vector<8x128xf32>
    %22 = arith.truncf %21 : vector<8x128xf32> to vector<8x128xbf16>
    %c2 = arith.constant 2 : index
    %c0_15 = arith.constant 0 : index
    %c0_16 = arith.constant 0 : index
    %23 = vector.load %arg2[%c2, %c0_15, %c0_16] : memref<6x128x128xbf16, #tpu.memory_space<vmem>>, vector<1x128x128xbf16>
    %24 = vector.shape_cast %23 : vector<1x128x128xbf16> to vector<128x128xbf16>
    %cst_17 = arith.constant dense<0.000000e+00> : vector<8x128xf32>
    %25 = tpu.matmul %22, %24, %cst_17 {dimension_numbers = #tpu.dot_dimension_numbers<[1], [0], [0], [1], [0, 0, 1, 1], [], []>} : vector<8x128xbf16>, vector<128x128xbf16>, vector<8x128xf32> -> vector<8x128xf32>
    %c2_18 = arith.constant 2 : index
    %c0_19 = arith.constant 0 : index
    %c0_20 = arith.constant 0 : index
    %26 = vector.load %arg3[%c2_18, %c0_19, %c0_20] : memref<6x1x128xf32, #tpu.memory_space<vmem>>, vector<1x1x128xf32>
    %27 = vector.shape_cast %26 : vector<1x1x128xf32> to vector<1x128xf32>
    %28 = vector.broadcast %27 : vector<1x128xf32> to vector<8x128xf32>
    %29 = arith.addf %25, %28 : vector<8x128xf32>
    %30 = arith.truncf %29 : vector<8x128xf32> to vector<8x128xbf16>
    %c3 = arith.constant 3 : index
    %c0_21 = arith.constant 0 : index
    %c0_22 = arith.constant 0 : index
    %31 = vector.load %arg2[%c3, %c0_21, %c0_22] : memref<6x128x128xbf16, #tpu.memory_space<vmem>>, vector<1x128x128xbf16>
    %32 = vector.shape_cast %31 : vector<1x128x128xbf16> to vector<128x128xbf16>
    %cst_23 = arith.constant dense<0.000000e+00> : vector<8x128xf32>
    %33 = tpu.matmul %30, %32, %cst_23 {dimension_numbers = #tpu.dot_dimension_numbers<[1], [0], [0], [1], [0, 0, 1, 1], [], []>} : vector<8x128xbf16>, vector<128x128xbf16>, vector<8x128xf32> -> vector<8x128xf32>
    %c3_24 = arith.constant 3 : index
    %c0_25 = arith.constant 0 : index
    %c0_26 = arith.constant 0 : index
    %34 = vector.load %arg3[%c3_24, %c0_25, %c0_26] : memref<6x1x128xf32, #tpu.memory_space<vmem>>, vector<1x1x128xf32>
    %35 = vector.shape_cast %34 : vector<1x1x128xf32> to vector<1x128xf32>
    %36 = vector.broadcast %35 : vector<1x128xf32> to vector<8x128xf32>
    %37 = arith.addf %33, %36 : vector<8x128xf32>
    %cst_27 = arith.constant 0.000000e+00 : f32
    %38 = vector.broadcast %cst_27 : f32 to vector<8x128xf32>
    %39 = arith.maximumf %37, %38 : vector<8x128xf32>
    %40 = arith.truncf %39 : vector<8x128xf32> to vector<8x128xbf16>
    %c4 = arith.constant 4 : index
    %c0_28 = arith.constant 0 : index
    %c0_29 = arith.constant 0 : index
    %41 = vector.load %arg2[%c4, %c0_28, %c0_29] : memref<6x128x128xbf16, #tpu.memory_space<vmem>>, vector<1x128x128xbf16>
    %42 = vector.shape_cast %41 : vector<1x128x128xbf16> to vector<128x128xbf16>
    %cst_30 = arith.constant dense<0.000000e+00> : vector<8x128xf32>
    %43 = tpu.matmul %40, %42, %cst_30 {dimension_numbers = #tpu.dot_dimension_numbers<[1], [0], [0], [1], [0, 0, 1, 1], [], []>} : vector<8x128xbf16>, vector<128x128xbf16>, vector<8x128xf32> -> vector<8x128xf32>
    %c4_31 = arith.constant 4 : index
    %c0_32 = arith.constant 0 : index
    %c0_33 = arith.constant 0 : index
    %44 = vector.load %arg3[%c4_31, %c0_32, %c0_33] : memref<6x1x128xf32, #tpu.memory_space<vmem>>, vector<1x1x128xf32>
    %45 = vector.shape_cast %44 : vector<1x1x128xf32> to vector<1x128xf32>
    %46 = vector.broadcast %45 : vector<1x128xf32> to vector<8x128xf32>
    %47 = arith.addf %43, %46 : vector<8x128xf32>
    %cst_34 = arith.constant 0.000000e+00 : f32
    %48 = vector.broadcast %cst_34 : f32 to vector<8x128xf32>
    %49 = arith.maximumf %47, %48 : vector<8x128xf32>
    %50 = arith.truncf %49 : vector<8x128xf32> to vector<8x128xbf16>
    %c5 = arith.constant 5 : index
    %c0_35 = arith.constant 0 : index
    %c0_36 = arith.constant 0 : index
    %51 = vector.load %arg2[%c5, %c0_35, %c0_36] : memref<6x128x128xbf16, #tpu.memory_space<vmem>>, vector<1x128x128xbf16>
    %52 = vector.shape_cast %51 : vector<1x128x128xbf16> to vector<128x128xbf16>
    %cst_37 = arith.constant dense<0.000000e+00> : vector<8x128xf32>
    %53 = tpu.matmul %50, %52, %cst_37 {dimension_numbers = #tpu.dot_dimension_numbers<[1], [0], [0], [1], [0, 0, 1, 1], [], []>} : vector<8x128xbf16>, vector<128x128xbf16>, vector<8x128xf32> -> vector<8x128xf32>
    %c5_38 = arith.constant 5 : index
    %c0_39 = arith.constant 0 : index
    %c0_40 = arith.constant 0 : index
    %54 = vector.load %arg3[%c5_38, %c0_39, %c0_40] : memref<6x1x128xf32, #tpu.memory_space<vmem>>, vector<1x1x128xf32>
    %55 = vector.shape_cast %54 : vector<1x1x128xf32> to vector<1x128xf32>
    %56 = vector.broadcast %55 : vector<1x128xf32> to vector<8x128xf32>
    %57 = arith.addf %53, %56 : vector<8x128xf32>
    %58 = arith.addf %29, %57 : vector<8x128xf32>
    %c0_41 = arith.constant 0 : index
    %c0_42 = arith.constant 0 : index
    %59 = vector.load %arg4[%c0_41, %c0_42] : memref<8x128xf32, #tpu.memory_space<vmem>>, vector<8x128xf32>
    tpu.vector_store %arg4[%c0_41, %c0_42], %58 {strides = array<i32>} : memref<8x128xf32, #tpu.memory_space<vmem>>, vector<8x128xf32>,
    return
  }
  func.func @transform_0(%arg0: i32) -> (i32, i32) {
    %c0_i32 = arith.constant 0 : i32
    %c0_i32_0 = arith.constant 0 : i32
    return %arg0, %c0_i32 : i32, i32
  }
  func.func @transform_1(%arg0: i32) -> (i32, i32, i32) {
    %c0_i32 = arith.constant 0 : i32
    %c0_i32_0 = arith.constant 0 : i32
    %c0_i32_1 = arith.constant 0 : i32
    %c0_i32_2 = arith.constant 0 : i32
    return %c0_i32, %c0_i32_0, %c0_i32_1 : i32, i32, i32
  }
  func.func @transform_2(%arg0: i32) -> (i32, i32, i32) {
    %c0_i32 = arith.constant 0 : i32
    %c0_i32_0 = arith.constant 0 : i32
    %c0_i32_1 = arith.constant 0 : i32
    %c0_i32_2 = arith.constant 0 : i32
    return %c0_i32, %c0_i32_0, %c0_i32_1 : i32, i32, i32
  }
  func.func @transform_3(%arg0: i32) -> (i32, i32) {
    %c0_i32 = arith.constant 0 : i32
    %c0_i32_0 = arith.constant 0 : i32
    return %arg0, %c0_i32 : i32, i32
  }
}

</mosaic_0001>

<bundles_post_ra>
// kernel: autoencoder_forward.1
= control target key start
LH: loop header
LB: loop body
LE: loop exit
PB: predicated region body
PF: predicated region fallthrough
CT: control target
= control target key end

     0   :  { %8 = vsyncpa [#allocation3], 0  ;;  %s1148_s0 = inlined_call_operand.hbm [shape: f32[8,64], index: 0, kind: input, shape index: {}]   ;;  %s1149_s1 = inlined_call_operand.hbm [shape: bf16[6,128,128], index: 1, kind: input, shape index: {}]   ;;  %s1150_s2 = inlined_call_operand.hbm [shape: f32[6,1,128], index: 2, kind: input, shape index: {}]   ;;  %s1151_s3 = inlined_call_operand.vmem [shape: f32[8,128], index: 3, kind: output, shape index: {}]  }
   0x1   :  { %9 = vsyncpa [#allocation5], 0  ;;  %s1051_s12 = smov [#allocation4]  }
   0x2   :  { %s25_s13 = sshll.u32 %s1051_s12, 4  ;;  %s26_s13 = int_to_ptr.vmem [resolvable:$true] %s25_s13 }
   0x3   :  { %s995_s14 = scalar_lea.vmem %s26_s13, 6144  ;;  %p1000_p1 = scmp.lt.s32.totalorder %s26_s13, %s26_s13 }
   0x4   :  { %p996_p0 = scmp.ne.s32.totalorder %s26_s13, %s995_s14  ;;  %p1001_p2 = scmp.lt.s32.totalorder %s995_s14, %s995_s14 }
   0x6   :  { %p1002_p3 = por %p1001_p2, %p1000_p1 }
   0x8   :  { %p1003_p4 = pnand %p1002_p3, %p996_p0 }
   0xa   :  { %1006 = shalt.err (!%p1003_p4)
}
   0xb   :  { %s1052_s15 = smov 64   ;;  %s1053_s16 = smov 4  }
   0xc   :  { %31 = dma.hbm_to_vmem [thread:$0]  %s1149_s1, 6144, %s26_s13, [#allocation5], %s1052_s15, %s1052_s15, %s1053_s16  }
   0xd   :  { %s1054_s19 = smov [#allocation2]   ;;  %s1055_s21 = smov [#allocation6]  }
   0xe   :  { %s16_s20 = sshll.u32 %s1054_s19, 4  ;;  %s37_s22 = sshll.u32 %s1055_s21, 4  ;;  %s17_s20 = int_to_ptr.vmem [resolvable:$true] %s16_s20  ;;  %s38_s22 = int_to_ptr.vmem [resolvable:$true] %s37_s22 }
   0xf   :  { %s1015_s23 = scalar_lea.vmem %s17_s20, 128  ;;  %p1020_p6 = scmp.lt.s32.totalorder %s17_s20, %s17_s20 }
  0x10   :  { %p1016_p5 = scmp.ne.s32.totalorder %s17_s20, %s1015_s23  ;;  %p1021_p7 = scmp.lt.s32.totalorder %s1015_s23, %s1015_s23 }
  0x12   :  { %p1022_p8 = por %p1021_p7, %p1020_p6 }
  0x14   :  { %p1023_p9 = pnand %p1022_p8, %p1016_p5 }
  0x16   :  { %1026 = shalt.err (!%p1023_p9)
}
  0x17   :  { %19 = dma.hbm_to_vmem [thread:$0]  %s1148_s0, 128, %s17_s20, [#allocation3]  }
  0x18   :  { %s1035_s26 = scalar_lea.vmem %s38_s22, 96  ;;  %p1040_p11 = scmp.lt.s32.totalorder %s38_s22, %s38_s22 }
  0x19   :  { %p1036_p10 = scmp.ne.s32.totalorder %s38_s22, %s1035_s26  ;;  %p1041_p12 = scmp.lt.s32.totalorder %s1035_s26, %s1035_s26 }
  0x1b   :  { %p1042_p13 = por %p1041_p12, %p1040_p11 }
  0x1d   :  { %p1043_p0 = pnand %p1042_p13, %p1036_p10 }
  0x1f   :  { %1046 = shalt.err (!%p1043_p0)
}
  0x20   :  { %s1056_s1 = smov 16   ;;  %s1057_s27 = smov 1  }
  0x21   :  { %43 = dma.hbm_to_vmem [thread:$0]  %s1150_s2, 96, %s38_s22, [#allocation5], %s1056_s1, %s1056_s1, %s1057_s27  }
  0x22   :  { %1047 = dma.done.wait [#allocation3], 128  }
  0x23   :  { %1048 = vsyncadd [#allocation3], 4294967168 }
  0x24   :  { %1049 = dma.done.wait [#allocation5], 6240  }
  0x25   :  { %1050 = vsyncadd [#allocation5], 4294961056  ;;  %v1058_v0 = vmov 0.0   ;;  %vm1059_vm0 = vmmov 0   ;;  %v943_v1 = vld [vmem:[#allocation4 + $0x18] sm:$0xff]   ;;  %v944_v2 = vld [vmem:[#allocation4 + $0x10] sm:$0xff]  }
  0x26   :  { %822 = vmatprep.subr.bf16.mxu0 %v1058_v0  ;;  %830 = vmatprep.mubr.msk.bf16.mxu0 %vm1059_vm0, %v1058_v0  ;;  %v947_v3 = vld [vmem:[#allocation4 + $0x78] sm:$0xff]   ;;  %v945_v4 = vld [vmem:[#allocation4 + $0x8] sm:$0xff]   ;;  %v948_v5 = vld [vmem:[#allocation4 + $0x70] sm:$0xff]   ;;  %vm95_vm1 = vcmask 523264  }
  0x27   :  { %834 = vmatprep.subr.bf16.mxu1 %v1058_v0  ;;  %850 = vmatprep.mubr.msk.bf16.mxu1 %vm1059_vm0, %v1058_v0  ;;  %v946_v6 = vld [vmem:[#allocation4] sm:$0xff]   ;;  %v54_v7 = vld [vmem:[#allocation2] sm:$0xff]  ;;  %v949_v8 = vld [vmem:[#allocation4 + $0x68] sm:$0xff]  }
  0x28   :  { %823 = vmatpush3.bf16.msra.mxu0 %v943_v1  ;;  %835 = vmatpush3.bf16.msra.mxu1 %v947_v3  ;;  %v55_v9 = vpack.c.bf16 %v54_v7, %v54_v7  ;;  %v950_v10 = vld [vmem:[#allocation4 + $0x60] sm:$0xff]   ;;  %v951_v11 = vld [vmem:[#allocation4 + $0x58] sm:$0xff]   ;;  %v952_v12 = vld [vmem:[#allocation4 + $0x50] sm:$0xff]  }
  0x29   :  { %824 = vmatprep.subr.bf16.mxu0 %v1058_v0  ;;  %836 = vmatprep.subr.bf16.mxu1 %v1058_v0  ;;  %v953_v13 = vld [vmem:[#allocation4 + $0x48] sm:$0xff]   ;;  %v954_v14 = vld [vmem:[#allocation4 + $0x40] sm:$0xff]   ;;  %v955_v15 = vld [vmem:[#allocation4 + $0xb8] sm:$0xff]  }
  0x2a   :  { %v956_v16 = vld [vmem:[#allocation4 + $0xb0] sm:$0xff]   ;;  %v957_v17 = vld [vmem:[#allocation4 + $0xa8] sm:$0xff]   ;;  %v958_v18 = vld [vmem:[#allocation4 + $0xa0] sm:$0xff]  }
  0x2b   :  { %v959_v19 = vld [vmem:[#allocation4 + $0x98] sm:$0xff]   ;;  %v960_v20 = vld [vmem:[#allocation4 + $0x90] sm:$0xff]   ;;  %v721_v21 = vld [vmem:[#allocation6] ss:$0 sm:$0xff] }
  0x2c   :  { %825 = vmatpush3.bf16.msra.mxu0 %v944_v2  ;;  %837 = vmatpush3.bf16.msra.mxu1 %v948_v5  ;;  %v961_v29 = vld [vmem:[#allocation4 + $0x88] sm:$0xff]   ;;  %v962_v30 = vld [vmem:[#allocation4 + $0x80] sm:$0xff]   ;;  %v963_v31 = vld [vmem:[#allocation4 + $0xf8] sm:$0xff]  }
  0x2d   :  { %826 = vmatprep.subr.bf16.mxu0 %v1058_v0  ;;  %838 = vmatprep.subr.bf16.mxu1 %v1058_v0  ;;  %v964_v32 = vld [vmem:[#allocation4 + $0xf0] sm:$0xff]   ;;  %v965_v33 = vld [vmem:[#allocation4 + $0xe8] sm:$0xff]   ;;  %v966_v34 = vld [vmem:[#allocation4 + $0xe0] sm:$0xff]  }
  0x2e   :  { %v967_v35 = vld [vmem:[#allocation4 + $0xd8] sm:$0xff]   ;;  %v968_v36 = vld [vmem:[#allocation4 + $0xd0] sm:$0xff]   ;;  %v969_v37 = vld [vmem:[#allocation4 + $0xc8] sm:$0xff]  }
  0x2f   :  { %v727_v38 = vld [vmem:[#allocation6 + $0x1] ss:$0 sm:$0xff]  ;;  %v971_v47 = vld [vmem:[#allocation4 + $0x138] sm:$0xff]   ;;  %v972_v48 = vld [vmem:[#allocation4 + $0x130] sm:$0xff]  }
  0x30   :  { %827 = vmatpush3.bf16.msra.mxu0 %v945_v4  ;;  %839 = vmatpush3.bf16.msra.mxu1 %v949_v8  ;;  %v970_v46 = vld [vmem:[#allocation4 + $0xc0] sm:$0xff]   ;;  %v973_v49 = vld [vmem:[#allocation4 + $0x128] sm:$0xff]   ;;  %v975_v51 = vld [vmem:[#allocation4 + $0x118] sm:$0xff]  }
  0x31   :  { %828 = vmatprep.subr.bf16.mxu0 %v1058_v0  ;;  %840 = vmatprep.subr.bf16.mxu1 %v1058_v0  ;;  %v974_v50 = vld [vmem:[#allocation4 + $0x120] sm:$0xff]   ;;  %v976_v52 = vld [vmem:[#allocation4 + $0x110] sm:$0xff]   ;;  %v977_v60 = vld [vmem:[#allocation4 + $0x108] sm:$0xff]  }
  0x32   :  { %v736_v53 = vld [vmem:[#allocation6 + $0x2] ss:$0 sm:$0xff]  ;;  %v979_v62 = vld [vmem:[#allocation4 + $0x178] sm:$0xff]   ;;  %v980_v63 = vld [vmem:[#allocation4 + $0x170] sm:$0xff]  }
  0x33   :  { %v978_v61 = vld [vmem:[#allocation4 + $0x100] sm:$0xff]   ;;  %v981_v1 = vld [vmem:[#allocation4 + $0x168] sm:$0xff]   ;;  %v983_v3 = vld [vmem:[#allocation4 + $0x158] sm:$0xff]  }
  0x34   :  { %829 = vmatpush3.bf16.msra.mxu0 %v946_v6  ;;  %841 = vmatpush3.bf16.msra.mxu1 %v950_v10  ;;  %v982_v2 = vld [vmem:[#allocation4 + $0x160] sm:$0xff]   ;;  %v984_v4 = vld [vmem:[#allocation4 + $0x150] sm:$0xff]  }
  0x35   :  { %854 = vmatprep.subr.bf16.mxu0 %v1058_v0  ;;  %842 = vmatprep.subr.bf16.mxu1 %v1058_v0  ;;  %v745_v5 = vld [vmem:[#allocation6 + $0x3] ss:$0 sm:$0xff] }
  0x37   :  { %831 = vmatmul.mubr.msk.bf16.vlgmr.msra.gmra.mxu0 %vm95_vm1, %v55_v9 }
  0x38   :  { %870 = vmatprep.mubr.msk.bf16.mxu0 %vm1059_vm0, %v1058_v0  ;;  %843 = vmatpush3.bf16.msra.mxu1 %v951_v11 }
  0x39   :  { %844 = vmatprep.subr.bf16.mxu1 %v1058_v0  ;;  %855 = vmatpush3.bf16.msra.mxu0 %v955_v15  ;;  %v754_v15 = vld [vmem:[#allocation6 + $0x4] ss:$0 sm:$0xff] }
  0x3a   :  { %856 = vmatprep.subr.bf16.mxu0 %v1058_v0 }
  0x3c   :  { %845 = vmatpush3.bf16.msra.mxu1 %v952_v12 }
  0x3d   :  { %846 = vmatprep.subr.bf16.mxu1 %v1058_v0  ;;  %857 = vmatpush3.bf16.msra.mxu0 %v956_v16 }
  0x3e   :  { %858 = vmatprep.subr.bf16.mxu0 %v1058_v0 }
  0x40   :  { %847 = vmatpush3.bf16.msra.mxu1 %v953_v13  ;;  %v985_v13 = vld [vmem:[#allocation4 + $0x148] sm:$0xff]  }
  0x41   :  { %848 = vmatprep.subr.bf16.mxu1 %v1058_v0  ;;  %859 = vmatpush3.bf16.msra.mxu0 %v957_v17 }
  0x42   :  { %860 = vmatprep.subr.bf16.mxu0 %v1058_v0 }
  0x44   :  { %849 = vmatpush3.bf16.msra.mxu1 %v954_v14  ;;  %v986_v14 = vld [vmem:[#allocation4 + $0x140] sm:$0xff]  }
  0x45   :  { %874 = vmatprep.subr.bf16.mxu1 %v1058_v0  ;;  %861 = vmatpush3.bf16.msra.mxu0 %v958_v18 }
  0x46   :  { %862 = vmatprep.subr.bf16.mxu0 %v1058_v0 }
  0x49   :  { %863 = vmatpush3.bf16.msra.mxu0 %v959_v19 }
  0x4a   :  { %864 = vmatprep.subr.bf16.mxu0 %v1058_v0 }
  0x4d   :  { %865 = vmatpush3.bf16.msra.mxu0 %v960_v20 }
  0x4e   :  { %866 = vmatprep.subr.bf16.mxu0 %v1058_v0 }
  0x51   :  { %867 = vmatpush3.bf16.msra.mxu0 %v961_v29 }
  0x52   :  { %868 = vmatprep.subr.bf16.mxu0 %v1058_v0 }
  0x55   :  { %869 = vmatpush3.bf16.msra.mxu0 %v962_v30 }
  0x56   :  { %894 = vmatprep.subr.bf16.mxu0 %v1058_v0 }
  0xf7   :  { %v133_v22 = vpop.f32.mrf.mxu0 }
  0xf8   :  { %v134_v23 = vadd.f32 %v721_v21, %v133_v22 }
  0xf9   :  { %v832_v24 = vpop.f32.mrf.mxu0 }
  0xfa   :  { %v139_v25 = vmax.f32 %v134_v23, 0.0  ;;  %v763_v23 = vld [vmem:[#allocation6 + $0x5] ss:$0 sm:$0xff] }
  0xfb   :  { %v136_v26 = vpop.f32.mrf.mxu0 }
  0xfc   :  { %v140_v27 = vpack.c.bf16 %v139_v25, %v139_v25 }
  0xfd   :  { %v833_v28 = vpop.f32.mrf.mxu0 }
  0xfe   :  { %851 = vmatmul.mubr.bf16.vlgmr.msra.gmra.mxu1 %v140_v27 }
  0xff   :  { %890 = vmatprep.mubr.msk.bf16.mxu1 %vm1059_vm0, %v1058_v0  ;;  %875 = vmatpush3.bf16.msra.mxu1 %v963_v31 }
 0x100   :  { %876 = vmatprep.subr.bf16.mxu1 %v1058_v0 }
 0x103   :  { %877 = vmatpush3.bf16.msra.mxu1 %v964_v32 }
 0x104   :  { %878 = vmatprep.subr.bf16.mxu1 %v1058_v0 }
 0x107   :  { %879 = vmatpush3.bf16.msra.mxu1 %v965_v33 }
 0x108   :  { %880 = vmatprep.subr.bf16.mxu1 %v1058_v0 }
 0x10b   :  { %881 = vmatpush3.bf16.msra.mxu1 %v966_v34 }
 0x10c   :  { %882 = vmatprep.subr.bf16.mxu1 %v1058_v0 }
 0x10f   :  { %883 = vmatpush3.bf16.msra.mxu1 %v967_v35 }
 0x110   :  { %884 = vmatprep.subr.bf16.mxu1 %v1058_v0 }
 0x113   :  { %885 = vmatpush3.bf16.msra.mxu1 %v968_v36 }
 0x114   :  { %886 = vmatprep.subr.bf16.mxu1 %v1058_v0 }
 0x117   :  { %887 = vmatpush3.bf16.msra.mxu1 %v969_v37 }
 0x118   :  { %888 = vmatprep.subr.bf16.mxu1 %v1058_v0 }
 0x11b   :  { %889 = vmatpush3.bf16.msra.mxu1 %v970_v46 }
 0x11c   :  { %914 = vmatprep.subr.bf16.mxu1 %v1058_v0 }
 0x1be   :  { %v248_v39 = vpop.f32.mrf.mxu1 }
 0x1bf   :  { %v249_v40 = vadd.f32 %v727_v38, %v248_v39 }
 0x1c0   :  { %v852_v41 = vpop.f32.mrf.mxu1 }
 0x1c1   :  { %v254_v42 = vmax.f32 %v249_v40, 0.0 }
 0x1c2   :  { %v251_v43 = vpop.f32.mrf.mxu1 }
 0x1c3   :  { %v255_v44 = vpack.c.bf16 %v254_v42, %v254_v42 }
 0x1c4   :  { %v853_v45 = vpop.f32.mrf.mxu1 }
 0x1c5   :  { %871 = vmatmul.mubr.bf16.vlgmr.msra.gmra.mxu0 %v255_v44 }
 0x1c6   :  { %910 = vmatprep.mubr.msk.bf16.mxu0 %vm1059_vm0, %v1058_v0  ;;  %895 = vmatpush3.bf16.msra.mxu0 %v971_v47 }
 0x1c7   :  { %896 = vmatprep.subr.bf16.mxu0 %v1058_v0 }
 0x1ca   :  { %897 = vmatpush3.bf16.msra.mxu0 %v972_v48 }
 0x1cb   :  { %898 = vmatprep.subr.bf16.mxu0 %v1058_v0 }
 0x1ce   :  { %899 = vmatpush3.bf16.msra.mxu0 %v973_v49 }
 0x1cf   :  { %900 = vmatprep.subr.bf16.mxu0 %v1058_v0 }
 0x1d2   :  { %901 = vmatpush3.bf16.msra.mxu0 %v974_v50 }
 0x1d3   :  { %902 = vmatprep.subr.bf16.mxu0 %v1058_v0 }
 0x1d6   :  { %903 = vmatpush3.bf16.msra.mxu0 %v975_v51 }
 0x1d7   :  { %904 = vmatprep.subr.bf16.mxu0 %v1058_v0 }
 0x1da   :  { %905 = vmatpush3.bf16.msra.mxu0 %v976_v52 }
 0x1db   :  { %906 = vmatprep.subr.bf16.mxu0 %v1058_v0 }
 0x1de   :  { %907 = vmatpush3.bf16.msra.mxu0 %v977_v60 }
 0x1df   :  { %908 = vmatprep.subr.bf16.mxu0 %v1058_v0 }
 0x1e2   :  { %909 = vmatpush3.bf16.msra.mxu0 %v978_v61 }
 0x285   :  { %v363_v54 = vpop.f32.mrf.mxu0 }
 0x286   :  { %v364_v55 = vadd.f32 %v736_v53, %v363_v54 }
 0x287   :  { %v872_v56 = vpop.f32.mrf.mxu0 }
 0x288   :  { %v369_v57 = vpack.c.bf16 %v364_v55, %v364_v55 }
 0x289   :  { %v366_v58 = vpop.f32.mrf.mxu0 }
 0x28a   :  { %891 = vmatmul.mubr.bf16.vlgmr.msra.gmra.mxu1 %v369_v57 }
 0x28b   :  { %v873_v59 = vpop.f32.mrf.mxu0  ;;  %930 = vmatprep.mubr.msk.bf16.mxu1 %vm1059_vm0, %v1058_v0  ;;  %915 = vmatpush3.bf16.msra.mxu1 %v979_v62 }
 0x28c   :  { %916 = vmatprep.subr.bf16.mxu1 %v1058_v0 }
 0x28f   :  { %917 = vmatpush3.bf16.msra.mxu1 %v980_v63 }
 0x290   :  { %918 = vmatprep.subr.bf16.mxu1 %v1058_v0 }
 0x293   :  { %919 = vmatpush3.bf16.msra.mxu1 %v981_v1 }
 0x294   :  { %920 = vmatprep.subr.bf16.mxu1 %v1058_v0 }
 0x297   :  { %921 = vmatpush3.bf16.msra.mxu1 %v982_v2 }
 0x298   :  { %922 = vmatprep.subr.bf16.mxu1 %v1058_v0 }
 0x29b   :  { %923 = vmatpush3.bf16.msra.mxu1 %v983_v3 }
 0x29c   :  { %924 = vmatprep.subr.bf16.mxu1 %v1058_v0 }
 0x29f   :  { %925 = vmatpush3.bf16.msra.mxu1 %v984_v4 }
 0x2a0   :  { %926 = vmatprep.subr.bf16.mxu1 %v1058_v0 }
 0x2a3   :  { %927 = vmatpush3.bf16.msra.mxu1 %v985_v13 }
 0x2a4   :  { %928 = vmatprep.subr.bf16.mxu1 %v1058_v0 }
 0x2a7   :  { %929 = vmatpush3.bf16.msra.mxu1 %v986_v14 }
 0x34a   :  { %v477_v6 = vpop.f32.mrf.mxu1 }
 0x34b   :  { %v478_v7 = vadd.f32 %v745_v5, %v477_v6 }
 0x34c   :  { %v892_v8 = vpop.f32.mrf.mxu1 }
 0x34d   :  { %v483_v9 = vmax.f32 %v478_v7, 0.0 }
 0x34e   :  { %v480_v10 = vpop.f32.mrf.mxu1 }
 0x34f   :  { %v484_v11 = vpack.c.bf16 %v483_v9, %v483_v9 }
 0x350   :  { %v893_v12 = vpop.f32.mrf.mxu1 }
 0x351   :  { %911 = vmatmul.mubr.bf16.vlgmr.msra.gmra.mxu0 %v484_v11 }
 0x411   :  { %v592_v16 = vpop.f32.mrf.mxu0 }
 0x412   :  { %v593_v17 = vadd.f32 %v754_v15, %v592_v16 }
 0x413   :  { %v912_v18 = vpop.f32.mrf.mxu0 }
 0x414   :  { %v598_v19 = vmax.f32 %v593_v17, 0.0 }
 0x415   :  { %v595_v20 = vpop.f32.mrf.mxu0 }
 0x416   :  { %v599_v21 = vpack.c.bf16 %v598_v19, %v598_v19 }
 0x417   :  { %v913_v22 = vpop.f32.mrf.mxu0 }
 0x418   :  { %931 = vmatmul.mubr.bf16.vlgmr.msra.gmra.mxu1 %v599_v21 }
 0x4d8   :  { %v707_v24 = vpop.f32.mrf.mxu1 }
 0x4d9   :  { %v708_v25 = vadd.f32 %v763_v23, %v707_v24 }
 0x4da   :  { %v932_v26 = vpop.f32.mrf.mxu1 }
 0x4db   :  { %v713_v27 = vadd.f32 %v708_v25, %v364_v55 }
 0x4dc   :  { %v710_v28 = vpop.f32.mrf.mxu1 }
 0x4dd   :  { %714 = vst [vmem:[%s1151_s3] sm:$0xff] %v713_v27 }
 0x4de   :  { %v933_v0 = vpop.f32.mrf.mxu1 }
 0x4df   :  { %719 = vsyncpa [#allocation3], 1 }
 0x4e0   :  { %720 = vsyncpa [#allocation5], 1 }

</bundles_post_ra>
